<compile_context>
chip_gen: v6e
topology: v6e:2x2x1
jax: 0.10.0
libtpu: 0.0.40
codegen_flags: <defaults>
</compile_context>

<pallas_src>
import functools

import jax
import jax.numpy as jnp
from jax.experimental import pallas as pl
from jax.experimental.pallas import tpu as pltpu


def _round_up(n, m):
    return ((n + m - 1) // m) * m


def gmf_kernel(u_tab_ref, i_tab_ref, u_idx_ref, i_idx_ref, o_ref):
    # u_tab_ref: [H, U] f32 (transposed user table, VMEM-resident)
    # i_tab_ref: [H, I] f32 (transposed item table, VMEM-resident)
    # u_idx_ref, i_idx_ref: [1, B_TILE] int32 (batch tile of indices, on lanes)
    # o_ref:     [1, B_TILE] f32 (lane-dense output row)
    num_users = u_tab_ref.shape[1]
    num_items = i_tab_ref.shape[1]
    b_tile = u_idx_ref.shape[1]

    u_idx = u_idx_ref[...]                                    # [1, Bt] int32
    i_idx = i_idx_ref[...]                                    # [1, Bt] int32

    # Exact one-hot gather on the MXU: table^T [H, N] @ onehot [N, Bt] -> [H, Bt].
    u_oh = (jax.lax.broadcasted_iota(jnp.int32, (num_users, b_tile), 0)
            == u_idx).astype(jnp.float32)                     # [U, Bt]
    i_oh = (jax.lax.broadcasted_iota(jnp.int32, (num_items, b_tile), 0)
            == i_idx).astype(jnp.float32)                     # [I, Bt]

    u_t = jnp.dot(u_tab_ref[...], u_oh,
                  preferred_element_type=jnp.float32)         # [H, Bt]
    v_t = jnp.dot(i_tab_ref[...], i_oh,
                  preferred_element_type=jnp.float32)         # [H, Bt]

    # Row-wise dot product == diag(u @ v.T): multiply then reduce over H
    # (sublane reduce on the XLU), all in f32.
    s = jnp.sum(u_t * v_t, axis=0, keepdims=True)             # [1, Bt]
    o_ref[...] = jax.nn.sigmoid(s)


@functools.partial(jax.jit, static_argnames=("b_tile",))
def mf_forward(x, user_emb_table, item_emb_table, *, b_tile=512):
    """x: [B, 2] int (user idx, item idx). Returns [B] float32."""
    B = x.shape[0]
    U, H = user_emb_table.shape
    I = item_emb_table.shape[0]

    # Batch tile: multiple of 128 lanes; cap at b_tile, pad B up to a multiple.
    b_tile = min(b_tile, _round_up(B, 128))
    b_pad = _round_up(B, b_tile)
    num_tiles = b_pad // b_tile

    user = x[:, 0].astype(jnp.int32)
    item = x[:, 1].astype(jnp.int32)
    pad = b_pad - B
    user2d = jnp.pad(user, (0, pad)).reshape(1, b_pad)        # pad rows gather idx 0
    item2d = jnp.pad(item, (0, pad)).reshape(1, b_pad)        # (results discarded)

    # One-time (tiny) transpose outside the kernel: hidden on sublanes,
    # vocab on lanes -> gathered tiles come out as [H, B_TILE].
    u_tab_t = user_emb_table.T                                # [H, U]
    i_tab_t = item_emb_table.T                                # [H, I]

    out = pl.pallas_call(
        gmf_kernel,
        out_shape=jax.ShapeDtypeStruct((1, b_pad), jnp.float32),
        grid=(num_tiles,),
        in_specs=[
            # Full tables, constant block index -> resident in VMEM across grid.
            pl.BlockSpec((H, U), lambda g: (0, 0)),
            pl.BlockSpec((H, I), lambda g: (0, 0)),
            # Per-tile index vectors, batch on lanes.
            pl.BlockSpec((1, b_tile), lambda g: (0, g)),
            pl.BlockSpec((1, b_tile), lambda g: (0, g)),
        ],
        out_specs=pl.BlockSpec((1, b_tile), lambda g: (0, g)),
        compiler_params=pltpu.CompilerParams(
            dimension_semantics=("parallel",)),               # megacore on v7x
    )(u_tab_t, i_tab_t, user2d, item2d)

    return out[0, :B]                                         # drop padding -> [B]


def reference_forward(x, user_emb_table, item_emb_table):
    u = user_emb_table[x[:, 0]]
    v = item_emb_table[x[:, 1]]
    gmf = jnp.dot(u, v.T, precision=jax.lax.Precision.HIGHEST)
    return jax.nn.sigmoid(jnp.diag(gmf))


if __name__ == "__main__":
    hidden_dim = 32
    user_num = 64
    item_num = 128
    batch = 8

    key = jax.random.PRNGKey(0)
    k_u, k_i, k_uu, k_ii = jax.random.split(key, 4)

    # torch.nn.Embedding default init is N(0, 1)
    user_emb_table = jax.random.normal(k_u, (user_num, hidden_dim), jnp.float32)
    item_emb_table = jax.random.normal(k_i, (item_num, hidden_dim), jnp.float32)

    users = jax.random.randint(k_uu, (batch,), 0, user_num, jnp.int32)
    items = jax.random.randint(k_ii, (batch,), 0, item_num, jnp.int32)
    x = jnp.stack([users, items], axis=1)                     # [B, 2]

    out = mf_forward(x, user_emb_table, item_emb_table)
    out = jax.block_until_ready(out)

    ref = reference_forward(x, user_emb_table, item_emb_table)
    assert out.shape == (batch,)
    assert jnp.allclose(out, ref, atol=1e-5, rtol=1e-5), (out, ref)

    print("KERNEL_OK")
</pallas_src>

<mosaic_0001>
module attributes {stable_mosaic.version = 11 : i64} {
  func.func @gmf_kernel(%arg0: i32, %arg1: memref<32x64xf32, #tpu.memory_space<vmem>>, %arg2: memref<32x128xf32, #tpu.memory_space<vmem>>, %arg3: memref<1x128xi32, #tpu.memory_space<vmem>>, %arg4: memref<1x128xi32, #tpu.memory_space<vmem>>, %arg5: memref<1x128xf32, #tpu.memory_space<vmem>>) attributes {dimension_semantics = [#tpu.dimension_semantics<parallel>], iteration_bounds = array<i64: 1>, scalar_prefetch = 0 : i64, scratch_operands = 0 : i64, tpu.core_type = #tpu.core_type<tc>, window_params = [{pipeline_mode = #tpu.pipeline_mode<synchronous>, transform_indices = @transform_0, window_bounds = array<i64: 32, 64>}, {pipeline_mode = #tpu.pipeline_mode<synchronous>, transform_indices = @transform_1, window_bounds = array<i64: 32, 128>}, {transform_indices = @transform_2, window_bounds = array<i64: 1, 128>}, {transform_indices = @transform_3, window_bounds = array<i64: 1, 128>}, {transform_indices = @transform_4, window_bounds = array<i64: 1, 128>}]} {
    %c0 = arith.constant 0 : index
    %c0_0 = arith.constant 0 : index
    %0 = vector.load %arg3[%c0, %c0_0] : memref<1x128xi32, #tpu.memory_space<vmem>>, vector<1x128xi32>
    %c0_1 = arith.constant 0 : index
    %c0_2 = arith.constant 0 : index
    %1 = vector.load %arg4[%c0_1, %c0_2] : memref<1x128xi32, #tpu.memory_space<vmem>>, vector<1x128xi32>
    %2 = tpu.iota {dimensions = array<i32: 0>} : vector<64x128xi32>
    %3 = vector.broadcast %0 : vector<1x128xi32> to vector<64x128xi32>
    %4 = arith.cmpi eq, %2, %3 : vector<64x128xi32>
    %5 = arith.extui %4 : vector<64x128xi1> to vector<64x128xi32>
    %6 = arith.sitofp %5 : vector<64x128xi32> to vector<64x128xf32>
    %7 = tpu.iota {dimensions = array<i32: 0>} : vector<128x128xi32>
    %8 = vector.broadcast %1 : vector<1x128xi32> to vector<128x128xi32>
    %9 = arith.cmpi eq, %7, %8 : vector<128x128xi32>
    %10 = arith.extui %9 : vector<128x128xi1> to vector<128x128xi32>
    %11 = arith.sitofp %10 : vector<128x128xi32> to vector<128x128xf32>
    %c0_3 = arith.constant 0 : index
    %c0_4 = arith.constant 0 : index
    %12 = vector.load %arg1[%c0_3, %c0_4] : memref<32x64xf32, #tpu.memory_space<vmem>>, vector<32x64xf32>
    %cst = arith.constant dense<0.000000e+00> : vector<32x128xf32>
    %13 = tpu.matmul %12, %6, %cst {dimension_numbers = #tpu.dot_dimension_numbers<[1], [0], [0], [1], [0, 0, 1, 1], [], []>} : vector<32x64xf32>, vector<64x128xf32>, vector<32x128xf32> -> vector<32x128xf32>
    %c0_5 = arith.constant 0 : index
    %c0_6 = arith.constant 0 : index
    %14 = vector.load %arg2[%c0_5, %c0_6] : memref<32x128xf32, #tpu.memory_space<vmem>>, vector<32x128xf32>
    %cst_7 = arith.constant dense<0.000000e+00> : vector<32x128xf32>
    %15 = tpu.matmul %14, %11, %cst_7 {dimension_numbers = #tpu.dot_dimension_numbers<[1], [0], [0], [1], [0, 0, 1, 1], [], []>} : vector<32x128xf32>, vector<128x128xf32>, vector<32x128xf32> -> vector<32x128xf32>
    %16 = arith.mulf %13, %15 : vector<32x128xf32>
    %cst_8 = arith.constant dense<0.000000e+00> : vector<128xf32>
    %17 = vector.multi_reduction <add>, %16, %cst_8 [0] : vector<32x128xf32> to vector<128xf32>
    %18 = vector.shape_cast %17 : vector<128xf32> to vector<1x128xf32>
    %19 = arith.negf %18 : vector<1x128xf32>
    %20 = math.exp %19 : vector<1x128xf32>
    %cst_9 = arith.constant 1.000000e+00 : f32
    %21 = vector.broadcast %cst_9 : f32 to vector<1x128xf32>
    %22 = arith.addf %21, %20 : vector<1x128xf32>
    %23 = arith.divf %21, %22 : vector<1x128xf32>
    %c0_10 = arith.constant 0 : index
    %c0_11 = arith.constant 0 : index
    %24 = vector.load %arg5[%c0_10, %c0_11] : memref<1x128xf32, #tpu.memory_space<vmem>>, vector<1x128xf32>
    tpu.vector_store %arg5[%c0_10, %c0_11], %23 {strides = array<i32>} : memref<1x128xf32, #tpu.memory_space<vmem>>, vector<1x128xf32>,
    return
  }
  func.func @transform_0(%arg0: i32) -> (i32, i32) {
    %c0_i32 = arith.constant 0 : i32
    %c0_i32_0 = arith.constant 0 : i32
    %c0_i32_1 = arith.constant 0 : i32
    return %c0_i32, %c0_i32_0 : i32, i32
  }
  func.func @transform_1(%arg0: i32) -> (i32, i32) {
    %c0_i32 = arith.constant 0 : i32
    %c0_i32_0 = arith.constant 0 : i32
    %c0_i32_1 = arith.constant 0 : i32
    return %c0_i32, %c0_i32_0 : i32, i32
  }
  func.func @transform_2(%arg0: i32) -> (i32, i32) {
    %c0_i32 = arith.constant 0 : i32
    %c0_i32_0 = arith.constant 0 : i32
    return %c0_i32, %arg0 : i32, i32
  }
  func.func @transform_3(%arg0: i32) -> (i32, i32) {
    %c0_i32 = arith.constant 0 : i32
    %c0_i32_0 = arith.constant 0 : i32
    return %c0_i32, %arg0 : i32, i32
  }
  func.func @transform_4(%arg0: i32) -> (i32, i32) {
    %c0_i32 = arith.constant 0 : i32
    %c0_i32_0 = arith.constant 0 : i32
    return %c0_i32, %arg0 : i32, i32
  }
}

</mosaic_0001>

<bundles_post_ra>
// kernel: mf_forward.1
= control target key start
LH: loop header
LB: loop body
LE: loop exit
PB: predicated region body
PF: predicated region fallthrough
CT: control target
= control target key end

     0   :  { %9 = vsyncpa [#allocation3], 0  ;;  %s733_s0 = inlined_call_operand.hbm [shape: f32[32,64], index: 0, kind: input, shape index: {}]   ;;  %s734_s1 = inlined_call_operand.hbm [shape: f32[32,128], index: 1, kind: input, shape index: {}]   ;;  %s735_s2 = inlined_call_operand.vmem [shape: s32[1,128], index: 2, kind: input, shape index: {}]   ;;  %s736_s3 = inlined_call_operand.vmem [shape: s32[1,128], index: 3, kind: input, shape index: {}]   ;;  %s737_s4 = inlined_call_operand.vmem [shape: f32[1,128], index: 4, kind: output, shape index: {}]  }
   0x1   :  { %10 = vsyncpa [#allocation5], 0  ;;  %s561_s15 = smov [#allocation2]  }
   0x2   :  { %s16_s16 = sshll.u32 %s561_s15, 4  ;;  %s17_s16 = int_to_ptr.vmem [resolvable:$true] %s16_s16 }
   0x3   :  { %s525_s17 = scalar_lea.vmem %s17_s16, 512  ;;  %p530_p1 = scmp.lt.s32.totalorder %s17_s16, %s17_s16 }
   0x4   :  { %p526_p0 = scmp.ne.s32.totalorder %s17_s16, %s525_s17  ;;  %p531_p2 = scmp.lt.s32.totalorder %s525_s17, %s525_s17 }
   0x6   :  { %p532_p3 = por %p531_p2, %p530_p1 }
   0x8   :  { %p533_p4 = pnand %p532_p3, %p526_p0 }
   0xa   :  { %536 = shalt.err (!%p533_p4)
}
   0xb   :  { %s562_s18 = smov 128   ;;  %s563_s19 = smov 8  }
   0xc   :  { %22 = dma.hbm_to_vmem [thread:$0]  %s733_s0, 512, %s17_s16, [#allocation3], %s562_s18, %s562_s18, %s563_s19  }
   0xd   :  { %s564_s22 = smov [#allocation4]  }
   0xe   :  { %s28_s23 = sshll.u32 %s564_s22, 4  ;;  %s29_s23 = int_to_ptr.vmem [resolvable:$true] %s28_s23 }
   0xf   :  { %s545_s24 = scalar_lea.vmem %s29_s23, 512  ;;  %p550_p6 = scmp.lt.s32.totalorder %s29_s23, %s29_s23 }
  0x10   :  { %p546_p5 = scmp.ne.s32.totalorder %s29_s23, %s545_s24  ;;  %p551_p7 = scmp.lt.s32.totalorder %s545_s24, %s545_s24 }
  0x12   :  { %p552_p8 = por %p551_p7, %p550_p6 }
  0x14   :  { %p553_p9 = pnand %p552_p8, %p546_p5 }
  0x16   :  { %556 = shalt.err (!%p553_p9)
}
  0x17   :  { %34 = dma.hbm_to_vmem [thread:$0]  %s734_s1, 512, %s29_s23, [#allocation5], %s562_s18, %s562_s18, %s563_s19  }
  0x18   :  { %557 = dma.done.wait [#allocation3], 512  }
  0x19   :  { %558 = vsyncadd [#allocation3], 4294966784 }
  0x1a   :  { %559 = dma.done.wait [#allocation5], 512  }
  0x1b   :  { %560 = vsyncadd [#allocation5], 4294966784  ;;  %v47_v0 = vlaneseq  ;;  %v611_v7 = vld [vmem:[%s736_s3] ss:$0 sm:$0xff]  ;;  %v565_v11 = vmov 1.0   ;;  %v145_v21 = vld [vmem:[#allocation2 + $0x8] sm:$0xff] }
  0x1c   :  { %v616_v8 = vld [vmem:[%s735_s2] ss:$0 sm:$0xff]  ;;  %v146_v23 = vld [vmem:[#allocation2 + $0x10] sm:$0xff]  ;;  %v147_v24 = vld [vmem:[#allocation2 + $0x18] sm:$0xff] }
  0x1d   :  { %v597_v1 = vshrl.u32 %v47_v0, 7  ;;  %v144_v20 = vld [vmem:[#allocation2] sm:$0xff]  ;;  %v247_v25 = vld [vmem:[#allocation4 + $0x8] sm:$0xff]  ;;  %v248_v26 = vld [vmem:[#allocation4 + $0x10] sm:$0xff] }
  0x1e   :  { %v246_v22 = vld [vmem:[#allocation4] sm:$0xff]  ;;  %v249_v27 = vld [vmem:[#allocation4 + $0x18] sm:$0xff] }
  0x1f   :  { %v91_v2 = vadd.s32 120, %v597_v1  ;;  %v90_v3 = vadd.s32 112, %v597_v1  ;;  %v602_v4 = vadd.s32 56, %v597_v1  ;;  %v89_v5 = vadd.s32 104, %v597_v1  ;;  %502 = vmatprep.mubr.f32.mxu1 %v246_v22 }
  0x20   :  { %v606_v6 = vadd.s32 48, %v597_v1  ;;  %v619_v9 = vadd.s32 40, %v597_v1  ;;  %v88_v10 = vadd.s32 96, %v597_v1  ;;  %v628_v12 = vadd.s32 32, %v597_v1 }
  0x21   :  { %vm111_vm0 = vcmp.eq.s32.totalorder %v91_v2, %v611_v7  ;;  %vm110_vm1 = vcmp.eq.s32.totalorder %v90_v3, %v611_v7  ;;  %vm67_vm2 = vcmp.eq.s32.totalorder %v602_v4, %v616_v8  ;;  %vm109_vm3 = vcmp.eq.s32.totalorder %v89_v5, %v611_v7 }
  0x22   :  { %470 = vmatprep.subr.msk.mxu1 %vm111_vm0, %v565_v11  ;;  %v87_v13 = vadd.s32 88, %v597_v1  ;;  %448 = vmatprep.subr.msk.mxu0 %vm67_vm2, %v565_v11  ;;  %vm66_vm4 = vcmp.eq.s32.totalorder %v606_v6, %v616_v8  ;;  %vm65_vm5 = vcmp.eq.s32.totalorder %v619_v9, %v616_v8  ;;  %v641_v14 = vadd.s32 24, %v597_v1 }
  0x23   :  { %471 = vmatpush3.msk.msra.mxu1 %vm111_vm0, %v565_v11  ;;  %449 = vmatpush3.msk.msra.mxu0 %vm67_vm2, %v565_v11  ;;  %vm108_vm6 = vcmp.eq.s32.totalorder %v88_v10, %v611_v7  ;;  %v86_v15 = vadd.s32 80, %v597_v1  ;;  %vm64_vm7 = vcmp.eq.s32.totalorder %v628_v12, %v616_v8  ;;  %v654_v16 = vadd.s32 16, %v597_v1 }
  0x24   :  { %472 = vmatprep.subr.msk.mxu1 %vm110_vm1, %v565_v11  ;;  %450 = vmatprep.subr.msk.mxu0 %vm66_vm4, %v565_v11  ;;  %vm107_vm8 = vcmp.eq.s32.totalorder %v87_v13, %v611_v7  ;;  %v85_v17 = vadd.s32 72, %v597_v1  ;;  %vm63_vm9 = vcmp.eq.s32.totalorder %v641_v14, %v616_v8  ;;  %v49_v18 = vadd.s32 8, %v597_v1 }
  0x25   :  { %473 = vmatpush3.msk.msra.mxu1 %vm110_vm1, %v565_v11  ;;  %451 = vmatpush3.msk.msra.mxu0 %vm66_vm4, %v565_v11  ;;  %vm106_vm10 = vcmp.eq.s32.totalorder %v86_v15, %v611_v7  ;;  %v84_v19 = vadd.s32 64, %v597_v1  ;;  %vm62_vm11 = vcmp.eq.s32.totalorder %v654_v16, %v616_v8  ;;  %vm60_vm15 = vcmp.eq.s32.totalorder %v597_v1, %v616_v8 }
  0x26   :  { %474 = vmatprep.subr.msk.mxu1 %vm109_vm3, %v565_v11  ;;  %452 = vmatprep.subr.msk.mxu0 %vm65_vm5, %v565_v11  ;;  %vm105_vm12 = vcmp.eq.s32.totalorder %v85_v17, %v611_v7  ;;  %vm61_vm13 = vcmp.eq.s32.totalorder %v49_v18, %v616_v8  ;;  %vm103_vm0 = vcmp.eq.s32.totalorder %v602_v4, %v611_v7  ;;  %vm148_vm1 = vcmask 523264  }
  0x27   :  { %475 = vmatpush3.msk.msra.mxu1 %vm109_vm3, %v565_v11  ;;  %453 = vmatpush3.msk.msra.mxu0 %vm65_vm5, %v565_v11  ;;  %vm104_vm14 = vcmp.eq.s32.totalorder %v84_v19, %v611_v7  ;;  %vm102_vm2 = vcmp.eq.s32.totalorder %v606_v6, %v611_v7  ;;  %vm101_vm3 = vcmp.eq.s32.totalorder %v619_v9, %v611_v7 }
  0x28   :  { %476 = vmatprep.subr.msk.mxu1 %vm108_vm6, %v565_v11  ;;  %454 = vmatprep.subr.msk.mxu0 %vm64_vm7, %v565_v11  ;;  %vm100_vm4 = vcmp.eq.s32.totalorder %v628_v12, %v611_v7  ;;  %vm99_vm5 = vcmp.eq.s32.totalorder %v641_v14, %v611_v7 }
  0x29   :  { %477 = vmatpush3.msk.msra.mxu1 %vm108_vm6, %v565_v11  ;;  %455 = vmatpush3.msk.msra.mxu0 %vm64_vm7, %v565_v11  ;;  %vm98_vm6 = vcmp.eq.s32.totalorder %v654_v16, %v611_v7  ;;  %vm97_vm7 = vcmp.eq.s32.totalorder %v49_v18, %v611_v7 }
  0x2a   :  { %478 = vmatprep.subr.msk.mxu1 %vm107_vm8, %v565_v11  ;;  %456 = vmatprep.subr.msk.mxu0 %vm63_vm9, %v565_v11 }
  0x2b   :  { %479 = vmatpush3.msk.msra.mxu1 %vm107_vm8, %v565_v11  ;;  %457 = vmatpush3.msk.msra.mxu0 %vm63_vm9, %v565_v11  ;;  %vm96_vm8 = vcmp.eq.s32.totalorder %v597_v1, %v611_v7 }
  0x2c   :  { %480 = vmatprep.subr.msk.mxu1 %vm106_vm10, %v565_v11  ;;  %458 = vmatprep.subr.msk.mxu0 %vm62_vm11, %v565_v11 }
  0x2d   :  { %481 = vmatpush3.msk.msra.mxu1 %vm106_vm10, %v565_v11  ;;  %459 = vmatpush3.msk.msra.mxu0 %vm62_vm11, %v565_v11 }
  0x2e   :  { %482 = vmatprep.subr.msk.mxu1 %vm105_vm12, %v565_v11  ;;  %460 = vmatprep.subr.msk.mxu0 %vm61_vm13, %v565_v11 }
  0x2f   :  { %483 = vmatpush3.msk.msra.mxu1 %vm105_vm12, %v565_v11  ;;  %461 = vmatpush3.msk.msra.mxu0 %vm61_vm13, %v565_v11 }
  0x30   :  { %484 = vmatprep.subr.msk.mxu1 %vm104_vm14, %v565_v11  ;;  %462 = vmatprep.subr.msk.mxu0 %vm60_vm15, %v565_v11 }
  0x31   :  { %485 = vmatpush3.msk.msra.mxu1 %vm104_vm14, %v565_v11  ;;  %463 = vmatpush3.msk.msra.mxu0 %vm60_vm15, %v565_v11 }
  0x32   :  { %486 = vmatprep.subr.msk.mxu1 %vm103_vm0, %v565_v11  ;;  %464 = vmatprep.mubr.msk.f32.mxu0 %vm148_vm1, %v144_v20 }
  0x33   :  { %487 = vmatpush3.msk.msra.mxu1 %vm103_vm0, %v565_v11  ;;  %465 = vmatmul.mubr.msk.f32.vlgmr.msra.gmra.mxu0 %vm148_vm1, %v145_v21 }
  0x34   :  { %488 = vmatprep.subr.msk.mxu1 %vm102_vm2, %v565_v11  ;;  %467 = vmatprep.mubr.msk.f32.mxu0 %vm148_vm1, %v146_v23 }
  0x35   :  { %489 = vmatpush3.msk.msra.mxu1 %vm102_vm2, %v565_v11 }
  0x36   :  { %490 = vmatprep.subr.msk.mxu1 %vm101_vm3, %v565_v11 }
  0x37   :  { %491 = vmatpush3.msk.msra.mxu1 %vm101_vm3, %v565_v11  ;;  %468 = vmatmul.mubr.msk.f32.gmra.mxu0 %vm148_vm1, %v147_v24 }
  0x38   :  { %492 = vmatprep.subr.msk.mxu1 %vm100_vm4, %v565_v11 }
  0x39   :  { %493 = vmatpush3.msk.msra.mxu1 %vm100_vm4, %v565_v11 }
  0x3a   :  { %494 = vmatprep.subr.msk.mxu1 %vm99_vm5, %v565_v11 }
  0x3b   :  { %495 = vmatpush3.msk.msra.mxu1 %vm99_vm5, %v565_v11 }
  0x3c   :  { %496 = vmatprep.subr.msk.mxu1 %vm98_vm6, %v565_v11 }
  0x3d   :  { %497 = vmatpush3.msk.msra.mxu1 %vm98_vm6, %v565_v11 }
  0x3e   :  { %498 = vmatprep.subr.msk.mxu1 %vm97_vm7, %v565_v11 }
  0x3f   :  { %499 = vmatpush3.msk.msra.mxu1 %vm97_vm7, %v565_v11 }
  0x40   :  { %500 = vmatprep.subr.msk.mxu1 %vm96_vm8, %v565_v11 }
  0x41   :  { %501 = vmatpush3.msk.msra.mxu1 %vm96_vm8, %v565_v11 }
  0x42   :  { %503 = vmatmul.mubr.f32.vlgmr.msra.gmra.mxu1 %v247_v25 }
  0x43   :  { %505 = vmatprep.mubr.f32.mxu1 %v248_v26 }
  0x46   :  { %506 = vmatmul.mubr.f32.gmra.mxu1 %v249_v27 }
  0xf3   :  { %v466_v28 = vpop.f32.mrf.mxu0 }
  0xf5   :  { %v227_v29 = vpop.f32.mrf.mxu0 }
  0xf7   :  { %v469_v31 = vpop.f32.mrf.mxu0 }
  0xf9   :  { %v237_v36 = vpop.f32.mrf.mxu0 }
 0x102   :  { %v504_v30 = vpop.f32.mrf.mxu1 }
 0x103   :  { %v336_v35 = vmul.f32 %v504_v30, %v466_v28 }
 0x104   :  { %v316_v32 = vpop.f32.mrf.mxu1 }
 0x105   :  { %v335_v33 = vmul.f32 %v316_v32, %v227_v29 }
 0x106   :  { %v507_v34 = vpop.f32.mrf.mxu1 }
 0x107   :  { %v339_v38 = vadd.f32 %v336_v35, %v335_v33  ;;  %v338_v40 = vmul.f32 %v507_v34, %v469_v31 }
 0x108   :  { %v326_v37 = vpop.f32.mrf.mxu1 }
 0x109   :  { %v337_v39 = vmul.f32 %v326_v37, %v237_v36 }
 0x10b   :  { %v340_v41 = vadd.f32 %v339_v38, %v337_v39 }
 0x10d   :  { %v341_v42 = vadd.f32 %v340_v41, %v338_v40 }
 0x10f   :  { %v342_v43 = vrot.slane %v341_v42, 4 }
 0x111   :  { %v343_v44 = vadd.f32 %v342_v43, %v341_v42 }
 0x113   :  { %v344_v45 = vrot.slane %v343_v44, 2 }
 0x115   :  { %v345_v46 = vadd.f32 %v344_v45, %v343_v44 }
 0x117   :  { %v346_v47 = vrot.slane %v345_v46, 1 }
 0x119   :  { %v347_v48 = vadd.f32 %v346_v47, %v345_v46 }
 0x11b   :  { %v415_v49 = vmul.f32 -1.442695, %v347_v48 }
 0x11d   :  { %513 = vpow2.f32 %v415_v49 }
 0x12a   :  { %v514_v50 = vpop.eup %513 }
 0x12b   :  { %v351_v51 = vadd.f32 1.0, %v514_v50 }
 0x12d   :  { %515 = vrcp.f32 %v351_v51 }
 0x13a   :  { %v516_v52 = vpop.eup %515 }
 0x13b   :  { %354 = vst [vmem:[%s737_s4] sm:$0x1] %v516_v52 }
 0x13c   :  { %359 = vsyncpa [#allocation3], 1 }
 0x13d   :  { %360 = vsyncpa [#allocation5], 1 }

</bundles_post_ra>
